<compile_context>
chip_gen: v6e
topology: v6e:2x2x1
jax: 0.10.0
libtpu: 0.0.40
codegen_flags: <defaults>
</compile_context>

<pallas_src>
import functools

import jax
import jax.numpy as jnp
from jax.experimental import pallas as pl
from jax.experimental.pallas import tpu as pltpu

LANES = 128          # lane width (last dim of every tile)
BLOCK_ROWS = 4096    # 4096 x 128 f32 = 2 MiB per tile


def _pact_kernel(clip_ref, x_ref, o_ref, *, num_bits):
    # clip_ref: (1,) f32 in SMEM (learnable clip value).
    # x_ref / o_ref: (block_rows, LANES) tiles in VMEM, native dtype.
    clip = clip_ref[0]
    levels = jnp.float32(2.0 ** num_bits - 1.0)
    n = levels / clip          # scalar, computed once per grid step
    inv_n = clip / levels      # scalar; replaces the per-element divide

    x = x_ref[...]                                   # native dtype (f32 / bf16)
    x = jnp.maximum(x, 0.0)                          # relu (native-dtype VPU op)
    x = jnp.minimum(x, clip.astype(x.dtype))         # clamp to clip_val
    # Quantization arithmetic in f32 so round-half decisions match the reference.
    q = jnp.round(x.astype(jnp.float32) * n) * inv_n
    o_ref[...] = q.astype(o_ref.dtype)


def _pact_jax(x, clip_val, num_bits):
    # Fused pure-JAX path: used for tiny tensors (kernel launch overhead dominates)
    # and for element counts that are not a multiple of 128 (avoids a pad + slice
    # pair that would triple the HBM traffic of this memory-bound op).
    c = clip_val.reshape(())
    xr = jnp.minimum(jnp.maximum(x, 0.0), c.astype(x.dtype))
    n = (2.0 ** num_bits - 1.0) / c
    return (jnp.round(xr.astype(jnp.float32) * n) / n).astype(x.dtype)


def _choose_block_rows(rows):
    if rows <= 8:
        return rows                                  # single block == full extent
    block = min(BLOCK_ROWS, ((rows + 7) // 8) * 8)
    # Keep >= 2 grid steps so both v7x TensorCores get work under "parallel".
    if pl.cdiv(rows, block) < 2:
        block = (((rows + 1) // 2 + 7) // 8) * 8
    return block


def pact_forward(x, clip_val, num_bits):
    """PACT forward. x: any-shape float array (e.g. NCHW). clip_val: shape-(1,) float."""
    orig_shape = x.shape
    dtype = x.dtype
    total = x.size

    # Small / ragged sizes: the fused XLA elementwise expression is already at the
    # HBM roofline and avoids both launch overhead and any pad/slice full copies.
    if total % LANES != 0 or total < 8 * LANES:
        return _pact_jax(x, clip_val, num_bits)

    x2d = x.reshape(-1, LANES)                       # native dtype, no wrapper cast
    rows = x2d.shape[0]
    block_rows = _choose_block_rows(rows)
    grid = (pl.cdiv(rows, block_rows),)

    cost = pl.CostEstimate(
        flops=5 * total,
        transcendentals=0,
        bytes_accessed=2 * total * x.dtype.itemsize,
    )

    out2d = pl.pallas_call(
        functools.partial(_pact_kernel, num_bits=num_bits),
        out_shape=jax.ShapeDtypeStruct((rows, LANES), dtype),
        grid=grid,
        in_specs=[
            pl.BlockSpec(memory_space=pltpu.MemorySpace.SMEM),      # clip_val scalar
            pl.BlockSpec((block_rows, LANES), lambda i: (i, 0)),    # x tile
        ],
        out_specs=pl.BlockSpec((block_rows, LANES), lambda i: (i, 0)),
        compiler_params=pltpu.CompilerParams(
            dimension_semantics=("parallel",)),
        cost_estimate=cost,
    )(clip_val.astype(jnp.float32), x2d)

    return out2d.reshape(orig_shape)


def pact_reference(x, clip_val, num_bits):
    # Pure-JAX transcription of the PyTorch forward (STE term is zero numerically).
    c = clip_val[0]
    xr = jnp.maximum(x, 0.0)
    xr = jnp.where(xr < c, xr, c)
    n = (2.0 ** num_bits - 1.0) / c
    return jnp.round(xr * n) / n


# TODO(synk): training parity needs a custom_vjp (STE for x; grad wrt clip_val =
# sum of upstream grad where x >= clip). Forward-only here, matching the spec.


if __name__ == "__main__":
    num_bits = 4
    init_act_clip_val = 2.0

    key = jax.random.PRNGKey(0)
    x = jax.random.normal(key, (2, 4, 16, 16), dtype=jnp.float32) * 2.0  # NCHW
    clip_val = jnp.array([init_act_clip_val], dtype=jnp.float32)         # nn.Parameter([2.])

    out = pact_forward(x, clip_val, num_bits)
    out = jax.block_until_ready(out)

    ref = pact_reference(x, clip_val, num_bits)
    assert out.shape == x.shape and out.dtype == x.dtype
    assert jnp.allclose(out, ref, atol=1e-6), "mismatch vs reference"

    print("KERNEL_OK")
</pallas_src>

<mosaic_0001>
module attributes {stable_mosaic.version = 11 : i64} {
  func.func @_pact_kernel(%arg0: i32, %arg1: memref<1xf32, #tpu.memory_space<smem>>, %arg2: memref<8x128xf32, #tpu.memory_space<vmem>>, %arg3: memref<8x128xf32, #tpu.memory_space<vmem>>) attributes {dimension_semantics = [#tpu.dimension_semantics<parallel>], iteration_bounds = array<i64: 2>, scalar_prefetch = 0 : i64, scratch_operands = 0 : i64, tpu.core_type = #tpu.core_type<tc>, window_params = [{transform_indices = @transform_0, window_bounds = array<i64: 1>}, {transform_indices = @transform_1, window_bounds = array<i64: 8, 128>}, {transform_indices = @transform_2, window_bounds = array<i64: 8, 128>}]} {
    %c0 = arith.constant 0 : index
    %0 = memref.load %arg1[%c0] : memref<1xf32, #tpu.memory_space<smem>>
    %cst = arith.constant 1.500000e+01 : f32
    %1 = arith.divf %cst, %0 : f32
    %cst_0 = arith.constant 1.500000e+01 : f32
    %2 = arith.divf %0, %cst_0 : f32
    %c0_1 = arith.constant 0 : index
    %c0_2 = arith.constant 0 : index
    %3 = vector.load %arg2[%c0_1, %c0_2] : memref<8x128xf32, #tpu.memory_space<vmem>>, vector<8x128xf32>
    %cst_3 = arith.constant 0.000000e+00 : f32
    %4 = vector.broadcast %cst_3 : f32 to vector<8x128xf32>
    %5 = arith.maximumf %3, %4 : vector<8x128xf32>
    %6 = vector.broadcast %0 : f32 to vector<8x128xf32>
    %7 = arith.minimumf %5, %6 : vector<8x128xf32>
    %8 = vector.broadcast %1 : f32 to vector<8x128xf32>
    %9 = arith.mulf %7, %8 : vector<8x128xf32>
    %10 = math.roundeven %9 : vector<8x128xf32>
    %11 = vector.broadcast %2 : f32 to vector<8x128xf32>
    %12 = arith.mulf %10, %11 : vector<8x128xf32>
    %c0_4 = arith.constant 0 : index
    %c0_5 = arith.constant 0 : index
    %13 = vector.load %arg3[%c0_4, %c0_5] : memref<8x128xf32, #tpu.memory_space<vmem>>, vector<8x128xf32>
    tpu.vector_store %arg3[%c0_4, %c0_5], %12 {strides = array<i32>} : memref<8x128xf32, #tpu.memory_space<vmem>>, vector<8x128xf32>,
    return
  }
  func.func @transform_0(%arg0: i32) -> i32 {
    %c0_i32 = arith.constant 0 : i32
    %c0_i32_0 = arith.constant 0 : i32
    return %c0_i32 : i32
  }
  func.func @transform_1(%arg0: i32) -> (i32, i32) {
    %c0_i32 = arith.constant 0 : i32
    %c0_i32_0 = arith.constant 0 : i32
    return %arg0, %c0_i32 : i32, i32
  }
  func.func @transform_2(%arg0: i32) -> (i32, i32) {
    %c0_i32 = arith.constant 0 : i32
    %c0_i32_0 = arith.constant 0 : i32
    return %arg0, %c0_i32 : i32, i32
  }
}

</mosaic_0001>

<bundles_post_ra>
// kernel: tpu_custom_call.1
= control target key start
LH: loop header
LB: loop body
LE: loop exit
PB: predicated region body
PF: predicated region fallthrough
CT: control target
= control target key end

     0   :  { %s587_s0 = inlined_call_operand.<no memory space> [shape: f32[1], index: 0, kind: input, shape index: {}]   ;;  %s588_s1 = inlined_call_operand.hbm [shape: f32[16,128], index: 1, kind: input, shape index: {}]   ;;  %s589_s2 = inlined_call_operand.hbm [shape: f32[16,128], index: 2, kind: output, shape index: {}]  }
   0x1   :  { %7 = sst [smem:[#allocation2]] %s587_s0 }
   0x2   :  { %8 = vsyncpa [#allocation4], 0 }
   0x3   :  { %10 = vsyncpa [#allocation4 + $0x1], 0 }
   0x4   :  { %11 = vsyncpa [#allocation5], 0 }
   0x5   :  { %13 = vsyncpa [#allocation5 + $0x1], 0  ;;  %s446_s11 = smov 0   ;;  %s448_s12 = smov 0  }
   0x6   :  { %s450_s13 = smov 0   ;;  %s452_s14 = smov 0  }
   0x7 LB: > { %s467_s0 = sadd.s32 4294967295, %s424_s14   ;;  %s262_s15 = sadd.s32 4294967294, %s424_s14   ;;  %s424_s14 = sphi %s452_s14, %s606_s14   ;;  %s420_s13 = sphi %s450_s13, %s605_s13   ;;  %s416_s12 = sphi %s448_s12, %s604_s12   ;;  %s412_s11 = sphi %s446_s11, %s603_s11  }
   0x8   : > { %s471_s16 = sadd.s32 1, %s424_s14   ;;  %s47_s17 = sadd.s32 1, %s420_s13 }
   0x9   : > { %s44_s18 = ssub.s32 %s424_s14, %s471_s16  ;;  %p54_p0 = scmp.ne.s32.totalorder %s420_s13, %s416_s12 }
   0xa   : > { %p45_p1 = scmp.eq.s32.totalorder %s44_s18, 0  ;;  %p55_p2 = scmp.eq.s32.totalorder %s424_s14, 0 }
   0xb   : > { %p60_p3 = scmp.ne.s32.totalorder %s416_s12, %s412_s11  ;;  %p61_p4 = scmp.eq.s32.totalorder %s467_s0, 0 }
   0xc   : > { %s483_s19 = scalar_select %p45_p1, %s420_s13, %s47_s17  }
   0xd   : > { %p485_p5 = por %p55_p2, %p54_p0  ;;  %p489_p6 = por %p61_p4, %p60_p3 }
   0xe   : > { %p84_p7 = scmp.eq.s32.totalorder %s467_s0, 1  ;;  %p90_p8 = scmp.eq.s32.totalorder %s262_s15, 1 }
   0xf   : > { %s593_s21 = scalar_select %p489_p6, 1, 0 }
  0x10   : > { %p296_p10 = scmp.lt.s32.totalorder %s424_s14, 2  ;;  %p496_p11 = por %p84_p7, %p54_p0 }
  0x11   : > { %p500_p12 = por %p90_p8, %p60_p3  ;;  %s113_s24 = sand.u32 1, %s420_s13  }
  0x12   : > { %s594_s22 = scalar_select %p496_p11, 1, 0 }
  0x13   : > { %s595_s23 = scalar_select %p500_p12, 1, 0 }
  0x14   : > { %s266_s25 = sshll.u32 %s424_s14, 7  ;;  %s265_s26 = sshll.u32 %s113_s24, 3 }
  0x15   : > { %s509_s29 = scalar_lea.hbm %s588_s1, %s266_s25  ;;  %s117_s30 = scalar_lea.vmem [#allocation3], %s265_s26 }
  0x16   : > { %s124_s3 = sshll.u32 %s117_s30, 4  ;;  %p513_p13 = pnand %p296_p10, %p485_p5  ;;  %s517_s3 = int_to_ptr.vmem [resolvable:$true] %s124_s3 }
  0x17   : > { %s114_s5 = scalar_lea.sflag [#allocation4], %s113_s24  ;;  %s332_s6 = scalar_lea.hbm %s509_s29, 128 }
  0x18   : > { %p333_p2 = scmp.ne.s32.totalorder %s509_s29, %s332_s6  ;;  %p334_p3 = pneg %p513_p13 }
  0x19   : > { %s337_s9 = scalar_lea.hbm %s588_s1, 256  ;;  %p338_p5 = scmp.lt.s32.totalorder %s509_s29, %s588_s1 }
  0x1a   : > { %p335_p4 = pnand %p334_p3, %p333_p2  ;;  %p339_p8 = scmp.lt.s32.totalorder %s337_s9, %s332_s6 }
  0x1c   : > { %p336_p7 = pneg %p335_p4  ;;  %p340_p10 = por %p339_p8, %p338_p5 }
  0x1e   : > { %p341_p9 = pnand %p340_p10, %p336_p7 }
  0x20   : > { %344 = shalt.err (!%p341_p9)
}
  0x21   : > { %s345_s17 = scalar_lea.vmem %s517_s3, 128  ;;  %s426_s18 = smov [#allocation3]  }
  0x22   : > { %p346_p0 = scmp.ne.s32.totalorder %s517_s3, %s345_s17  ;;  %s350_s20 = sshll.u32 %s426_s18, 4  ;;  %s351_s20 = int_to_ptr.vmem [resolvable:$false] %s350_s20 }
  0x23   : > { %s352_s24 = scalar_lea.vmem %s351_s20, 256  ;;  %p353_p4 = scmp.lt.s32.totalorder %s517_s3, %s351_s20 }
  0x24   : > { %p348_p1 = pnand %p346_p0, %p334_p3  ;;  %p354_p12 = scmp.lt.s32.totalorder %s352_s24, %s345_s17 }
  0x26   : > { %p349_p2 = pneg %p348_p1  ;;  %p355_p11 = por %p354_p12, %p353_p4 }
  0x28   : > { %p356_p6 = pnand %p355_p11, %p349_p2 }
  0x2a   : > { %359 = shalt.err (!%p356_p6)
}
  0x2b   : > { %291 = dma.hbm_to_vmem [thread:$0]  (!%p513_p13), %s509_s29, 128, %s517_s3, %s114_s5  }
  0x2c   : > { %p597_p9 = scmp.lt.s32.totalorder %s424_s14, 3  ;;  %p598_p7 = scmp.ge.s32.totalorder %s424_s14, 1 }
  0x2e   : > { %p130_p0 = pnand %p598_p7, %p597_p9 }
  0x2f   : > { %s544_s25 = sand.u32 (!%p130_p0), 1, %s416_s12   ;;  %p599_p6 = scmp.ne.s32.totalorder (!%p130_p0), %s593_s21, 0 }
  0x30   : > { %133 = sbr.rel (%p130_p0) target bundleno = 154 (0x9a), region = 28  ;;  %s268_s26 = sshll.u32 (!%p130_p0), %s544_s25, 3 }
  0x31   : > { %s136_s27 = scalar_lea.sflag (!%p130_p0), [#allocation4], %s544_s25  ;;  %s139_s28 = scalar_lea.vmem (!%p130_p0), [#allocation3], %s268_s26 }
  0x35   : > { %403 = dma.done.wait (%p599_p6), %s136_s27, 128  }
  0x36   : > { %405 = vsyncadd (%p599_p6), %s136_s27, 4294967168  ;;  %s160_s30 = sld [smem:[#allocation2]]  ;;  %v168_v2 = vld [vmem:[%s139_s28] sm:$0xff]  ;;  %s271_s21 = sshll.u32 %s467_s0, 7 }
  0x37   : > { %v169_v3 = vmax.f32 %v168_v2, 0.0  ;;  %s159_s5 = scalar_lea.vmem [#allocation6], %s268_s26  ;;  %s190_s9 = scalar_lea.hbm %s589_s2, %s271_s21 }
  0x38   : > { %s192_s6 = sshll.u32 %s159_s5, 4  ;;  %s179_s10 = scalar_lea.sflag [#allocation5], %s544_s25  ;;  %s193_s6 = int_to_ptr.vmem [resolvable:$true] %s192_s6 }
  0x39   : > { %s360_s15 = scalar_lea.vmem %s193_s6, 128  ;;  %p600_p12 = scmp.ne.s32.totalorder %s594_s22, 0 }
  0x3a   : > { %p361_p11 = scmp.ne.s32.totalorder %s193_s6, %s360_s15  ;;  %s427_s17 = smov [#allocation6]  }
  0x3b   : > { %s364_s18 = sshll.u32 %s427_s17, 4  ;;  %s365_s18 = int_to_ptr.vmem [resolvable:$false] %s364_s18 }
  0x3c   : > { %v161_v0 = vstv %s160_s30  ;;  %s167_s4 = smul.f32 0.06666667, %s160_s30  ;;  %p362_p13 = pnand %p361_p11, %p600_p12 }
  0x3d   : > { %330 = vrcp.f32 %v161_v0  ;;  %v171_v4 = vmin.f32 %v169_v3, %v161_v0  ;;  %s366_s0 = scalar_lea.vmem %s365_s18, 256  ;;  %p367_p3 = scmp.lt.s32.totalorder %s193_s6, %s365_s18 }
  0x3e   : > { %v175_v12 = vstv %s167_s4  ;;  %p363_p1 = pneg %p362_p13  ;;  %p368_p5 = scmp.lt.s32.totalorder %s366_s0, %s360_s15 }
  0x40   : > { %p369_p8 = por %p368_p5, %p367_p3 }
  0x42   : > { %p370_p10 = pnand %p369_p8, %p363_p1 }
  0x4a   : > { %v331_v1 = vpop.eup %330 }
  0x4b   : > { %274 = vpush %v331_v1 }
  0x7c   : > { %s275_s29 = spop %274 }
  0x7d   : > { %s164_s3 = smul.f32 15.0, %s275_s29 }
  0x7f   : > { %v172_v5 = vstv %s164_s3 }
  0x80   : > { %v173_v6 = vmul.f32 %v172_v5, %v171_v4 }
  0x82   : > { %v278_v7 = vcvt.f32.s32 %v173_v6  ;;  %v276_v9 = vand.u32 2147483647, %v173_v6  ;;  %v281_v11 = vand.u32 2147483648, %v173_v6 }
  0x84   : > { %v279_v8 = vcvt.s32.f32 %v278_v7  ;;  %vm277_vm0 = vcmp.lt.f32.partialorder %v276_v9, 8388608.0 }
  0x86   : > { %v280_v10 = vand.u32 2147483647, %v279_v8 }
  0x88   : > { %v282_v13 = vor.u32 %v281_v11, %v280_v10 }
  0x8a   : > { %v283_v14 = vsel %vm277_vm0, %v282_v13, %v173_v6 }
  0x8b   : > { %v176_v15 = vmul.f32 %v283_v14, %v175_v12 }
  0x8d   : > { %177 = vst [vmem:[%s159_s5] sm:$0xff] %v176_v15 }
  0x8e   : > { %373 = shalt.err (!%p370_p10)
}
  0x8f   : > { %s374_s20 = scalar_lea.hbm %s190_s9, 128  ;;  %s378_s26 = scalar_lea.hbm %s589_s2, 256 }
  0x90   : > { %p375_p2 = scmp.ne.s32.totalorder %s190_s9, %s374_s20  ;;  %p379_p7 = scmp.lt.s32.totalorder %s190_s9, %s589_s2 }
  0x91   : > { %p380_p0 = scmp.lt.s32.totalorder %s378_s26, %s374_s20 }
  0x92   : > { %p376_p4 = pnand %p375_p2, %p600_p12 }
  0x93   : > { %p381_p6 = por %p380_p0, %p379_p7 }
  0x94   : > { %p377_p9 = pneg %p376_p4 }
  0x96   : > { %p382_p11 = pnand %p381_p6, %p377_p9 }
  0x98   : > { %385 = shalt.err (!%p382_p11)
}
  0x99   : > { %286 = dma.vmem_to_hbm [thread:$0]  (%p600_p12), %s193_s6, 128, %s190_s9, %s179_s10  }
  0x9a PF: > { %s204_s30 = sand.u32 1, %s412_s11   ;;  %p601_p13 = scmp.ne.s32.totalorder %s595_s23, 0 }
  0x9b   : > { %p602_p1 = scmp.ge.s32.totalorder %s424_s14, 2  ;;  %s205_s29 = scalar_lea.sflag [#allocation5], %s204_s30 }
  0x9d   : > { %p293_p3 = pnand %p602_p1, %p601_p13 }
  0x9f   : > { %p294_p5 = pneg %p293_p3 }
  0xa1   : > { %407 = dma.done.wait (%p294_p5), %s205_s29, 128  }
  0xa2   : > { %409 = vsyncadd (%p294_p5), %s205_s29, 4294967168  ;;  %p16_p8 = scmp.ge.s32.totalorder %s471_s16, 4   ;;  %s603_s11 = smov %s416_s12 }
  0xa3   : > { %s604_s12 = smov %s420_s13  ;;  %s605_s13 = smov %s483_s19 }
  0xa4   : > { %s606_s14 = smov %s471_s16  ;;  %18 = sbr.rel (!%p16_p8) target bundleno = 7 (0x7), region = 73 }
  0xa9   :  { %210 = vsyncpa [#allocation4], 1 }
  0xaa   :  { %212 = vsyncpa [#allocation4 + $0x1], 1 }
  0xab   :  { %213 = vsyncpa [#allocation5], 1 }
  0xac   :  { %215 = vsyncpa [#allocation5 + $0x1], 1 }

</bundles_post_ra>
